<compile_context>
chip_gen: v5e
topology: v5e:2x2
jax: 0.10.0
libtpu: 0.0.40
codegen_flags: <defaults>
</compile_context>

<pallas_src>
import functools

import jax
import jax.numpy as jnp
from jax.experimental import pallas as pl
from jax.experimental.pallas import tpu as pltpu


def _embed_kernel(tok_ref, emb_ref, out_ref, *, n):
    """Gather N embedding rows (eval mode: dropout is identity).

    tok_ref: (N,)   int32   SMEM  (token ids as addressing scalars)
    emb_ref: (V, E) float32 VMEM  (embedding table)
    out_ref: (N, E) float32 VMEM
    """
    for i in range(n):
        out_ref[pl.ds(i, 1), :] = emb_ref[pl.ds(tok_ref[i], 1), :]


def _embed_dropout_kernel(tok_ref, emb_ref, mask_ref, out_ref, *, n):
    """Gather N embedding rows and apply the fused (pre-scaled) dropout mask.

    tok_ref:  (N,)   int32   SMEM
    emb_ref:  (V, E) float32 VMEM
    mask_ref: (N, E) float32 VMEM  (values are 0.0 or 1/(1-p)^2, drawn outside)
    out_ref:  (N, E) float32 VMEM
    """
    for i in range(n):
        row = emb_ref[pl.ds(tok_ref[i], 1), :]          # (1, E) sublane slice
        out_ref[pl.ds(i, 1), :] = row * mask_ref[pl.ds(i, 1), :]


def _fused_dropout_mask(key, shape, drop_prob):
    """Two sequential dropouts fused: keep prob (1-p)^2, scale 1/(1-p)^2.

    Distributionally identical per element to torch's two draws (will not
    bit-match torch's RNG stream, which is unavoidable)."""
    keep_prob = (1.0 - drop_prob) ** 2
    scale = 1.0 / keep_prob
    keep = jax.random.uniform(key, shape, dtype=jnp.float32) < keep_prob
    return jnp.where(keep, jnp.float32(scale), jnp.float32(0.0))


def encoder_forward(src, emb_table, *, drop_prob=0.3, train=False,
                    rng_key=None, use_pallas=None):
    """Faithful port of Encoder.forward.

    src:       (seq, batch) int32 token ids.
    emb_table: (input_size, embedding_size) float32 embedding weight.

    Returns (output, hidden, cell) exactly as the torch forward does, via the
    tensor unpack `output, (hidden, cell) = dropped`, which requires
    seq == 2 and batch == 2.

    use_pallas: None = auto. Per the perf review the whole workload is ~2 KiB,
    so the auto path skips the Pallas custom call (pure XLA gather + mask);
    pass True to force the Pallas kernel (used for validation / fusion tests).
    """
    s, b = src.shape
    v, e = emb_table.shape
    assert s == 2 and b == 2, "forward's tensor-unpack requires seq == batch == 2"
    assert 0.0 <= drop_prob < 1.0, "drop_prob must be in [0, 1)"
    n = s * b

    apply_dropout = bool(train) and drop_prob > 0.0
    if apply_dropout and rng_key is None:
        rng_key = jax.random.PRNGKey(0)
    if use_pallas is None:
        use_pallas = False   # fixed pallas_call overhead >> the 512 B of work

    # Clamp ids: in the kernel they index VMEM sublanes with no runtime OOB check.
    tokens = jnp.clip(src.reshape(n).astype(jnp.int32), 0, v - 1)

    mask = None
    if apply_dropout:
        mask = _fused_dropout_mask(rng_key, (n, e), drop_prob)   # pre-scaled

    if not use_pallas:
        dropped = emb_table[tokens]                 # (n, e) plain XLA gather
        if apply_dropout:
            dropped = dropped * mask
        dropped = dropped.reshape(s, b, e)
    else:
        smem = pl.BlockSpec(memory_space=pltpu.MemorySpace.SMEM)
        vmem = pl.BlockSpec(memory_space=pltpu.MemorySpace.VMEM)
        if apply_dropout:
            kernel = functools.partial(_embed_dropout_kernel, n=n)
            flat = pl.pallas_call(
                kernel,
                out_shape=jax.ShapeDtypeStruct((n, e), jnp.float32),
                in_specs=[smem, vmem, vmem],   # tokens, table, mask
                out_specs=vmem,
            )(tokens, emb_table, mask)
        else:
            kernel = functools.partial(_embed_kernel, n=n)
            flat = pl.pallas_call(
                kernel,
                out_shape=jax.ShapeDtypeStruct((n, e), jnp.float32),
                in_specs=[smem, vmem],         # tokens, table
                out_specs=vmem,
            )(tokens, emb_table)
        dropped = flat.reshape(s, b, e)   # == dropout(dropout(embedding(src)))

    # Replicate the torch forward's tensor unpacking:
    #     output, (hidden, cell) = dropped
    output = dropped[0]       # (batch, E)
    hidden = dropped[1][0]    # (E,)
    cell = dropped[1][1]      # (E,)
    return output, hidden, cell


if __name__ == "__main__":
    key = jax.random.PRNGKey(0)
    k_emb, k_src, k_drop = jax.random.split(key, 3)

    input_size = 16        # vocab size
    embedding_size = 32
    hidden_size = 32       # defined in __init__ but unused by the forward as written
    seq_len, batch = 2, 2  # forced by the forward's tensor unpack
    drop_prob = 0.3

    # nn.Embedding default init is N(0, 1).
    emb_table = jax.random.normal(k_emb, (input_size, embedding_size), dtype=jnp.float32)
    src = jax.random.randint(k_src, (seq_len, batch), 0, input_size, dtype=jnp.int32)

    ref = emb_table[src]   # (seq, batch, E) plain-JAX reference gather

    # 1) Forced Pallas gather path, eval mode (deterministic) -> exact kernel check.
    out_k, hid_k, cell_k = encoder_forward(
        src, emb_table, drop_prob=drop_prob, train=False, use_pallas=True)
    jax.block_until_ready((out_k, hid_k, cell_k))
    assert out_k.shape == (batch, embedding_size)
    assert hid_k.shape == (embedding_size,)
    assert cell_k.shape == (embedding_size,)
    assert jnp.allclose(out_k, ref[0], atol=1e-6)
    assert jnp.allclose(hid_k, ref[1][0], atol=1e-6)
    assert jnp.allclose(cell_k, ref[1][1], atol=1e-6)

    # 2) Default eval path (Pallas bypassed, pure XLA gather).
    out_e, hid_e, cell_e = encoder_forward(src, emb_table, drop_prob=drop_prob, train=False)
    jax.block_until_ready((out_e, hid_e, cell_e))
    assert jnp.allclose(out_e, ref[0])
    assert jnp.allclose(hid_e, ref[1][0])
    assert jnp.allclose(cell_e, ref[1][1])

    # 3) Forced Pallas training path: every element must be either 0 (dropped)
    #    or ref * 1/(1-p)^2 (kept and rescaled).
    out_t, hid_t, cell_t = encoder_forward(
        src, emb_table, drop_prob=drop_prob, train=True, rng_key=k_drop,
        use_pallas=True)
    jax.block_until_ready((out_t, hid_t, cell_t))
    dropped_t = jnp.stack([out_t, jnp.stack([hid_t, cell_t])])   # (seq, batch, E)
    scale = 1.0 / (1.0 - drop_prob) ** 2
    ok = jnp.isclose(dropped_t, 0.0, atol=1e-7) | \
         jnp.isclose(dropped_t, ref * scale, rtol=1e-5, atol=1e-5)
    assert bool(jnp.all(ok))

    # 4) Default (XLA) training path with the same key must match the Pallas path
    #    bit-for-bit (mask is drawn outside the kernel from the same jax.random key).
    out_x, hid_x, cell_x = encoder_forward(
        src, emb_table, drop_prob=drop_prob, train=True, rng_key=k_drop)
    jax.block_until_ready((out_x, hid_x, cell_x))
    assert jnp.array_equal(out_x, out_t)
    assert jnp.array_equal(hid_x, hid_t)
    assert jnp.array_equal(cell_x, cell_t)

    print("KERNEL_OK")
</pallas_src>

<mosaic_0001>
module attributes {stable_mosaic.version = 11 : i64} {
  func.func @_embed_kernel(%arg0: memref<4xi32, #tpu.memory_space<smem>>, %arg1: memref<16x32xf32, #tpu.memory_space<vmem>>, %arg2: memref<4x32xf32, #tpu.memory_space<vmem>>) attributes {dimension_semantics = [], scalar_prefetch = 0 : i64, scratch_operands = 0 : i64, tpu.core_type = #tpu.core_type<tc>} {
    %c0 = arith.constant 0 : index
    %0 = memref.load %arg0[%c0] : memref<4xi32, #tpu.memory_space<smem>>
    %1 = arith.index_cast %0 : i32 to index
    %c0_0 = arith.constant 0 : index
    %2 = vector.load %arg1[%1, %c0_0] : memref<16x32xf32, #tpu.memory_space<vmem>>, vector<1x32xf32>
    %c0_1 = arith.constant 0 : index
    %c0_2 = arith.constant 0 : index
    %3 = vector.load %arg2[%c0_1, %c0_2] : memref<4x32xf32, #tpu.memory_space<vmem>>, vector<1x32xf32>
    tpu.vector_store %arg2[%c0_1, %c0_2], %2 {strides = array<i32>} : memref<4x32xf32, #tpu.memory_space<vmem>>, vector<1x32xf32>,
    %c1 = arith.constant 1 : index
    %4 = memref.load %arg0[%c1] : memref<4xi32, #tpu.memory_space<smem>>
    %5 = arith.index_cast %4 : i32 to index
    %c0_3 = arith.constant 0 : index
    %6 = vector.load %arg1[%5, %c0_3] : memref<16x32xf32, #tpu.memory_space<vmem>>, vector<1x32xf32>
    %c1_4 = arith.constant 1 : index
    %c0_5 = arith.constant 0 : index
    %7 = vector.load %arg2[%c1_4, %c0_5] : memref<4x32xf32, #tpu.memory_space<vmem>>, vector<1x32xf32>
    tpu.vector_store %arg2[%c1_4, %c0_5], %6 {strides = array<i32>} : memref<4x32xf32, #tpu.memory_space<vmem>>, vector<1x32xf32>,
    %c2 = arith.constant 2 : index
    %8 = memref.load %arg0[%c2] : memref<4xi32, #tpu.memory_space<smem>>
    %9 = arith.index_cast %8 : i32 to index
    %c0_6 = arith.constant 0 : index
    %10 = vector.load %arg1[%9, %c0_6] : memref<16x32xf32, #tpu.memory_space<vmem>>, vector<1x32xf32>
    %c2_7 = arith.constant 2 : index
    %c0_8 = arith.constant 0 : index
    %11 = vector.load %arg2[%c2_7, %c0_8] : memref<4x32xf32, #tpu.memory_space<vmem>>, vector<1x32xf32>
    tpu.vector_store %arg2[%c2_7, %c0_8], %10 {strides = array<i32>} : memref<4x32xf32, #tpu.memory_space<vmem>>, vector<1x32xf32>,
    %c3 = arith.constant 3 : index
    %12 = memref.load %arg0[%c3] : memref<4xi32, #tpu.memory_space<smem>>
    %13 = arith.index_cast %12 : i32 to index
    %c0_9 = arith.constant 0 : index
    %14 = vector.load %arg1[%13, %c0_9] : memref<16x32xf32, #tpu.memory_space<vmem>>, vector<1x32xf32>
    %c3_10 = arith.constant 3 : index
    %c0_11 = arith.constant 0 : index
    %15 = vector.load %arg2[%c3_10, %c0_11] : memref<4x32xf32, #tpu.memory_space<vmem>>, vector<1x32xf32>
    tpu.vector_store %arg2[%c3_10, %c0_11], %14 {strides = array<i32>} : memref<4x32xf32, #tpu.memory_space<vmem>>, vector<1x32xf32>,
    return
  }
}

</mosaic_0001>

<bundles_post_ra>
// kernel: tpu_custom_call.1
= control target key start
LH: loop header
LB: loop body
LE: loop exit
PB: predicated region body
PF: predicated region fallthrough
CT: control target
= control target key end

     0   :  { %7 = vsyncpa [#allocation5], 0  ;;  %s187_s0 = inlined_call_operand.hbm [shape: s32[4], index: 0, kind: input, shape index: {}]   ;;  %s188_s1 = inlined_call_operand.hbm [shape: f32[16,32], index: 1, kind: input, shape index: {}]   ;;  %s189_s2 = inlined_call_operand.hbm [shape: f32[4,32], index: 2, kind: output, shape index: {}]  }
   0x1   :  { %8 = vsyncpa [#allocation3], 0 }
   0x2   :  { %9 = vsyncpa [#allocation4], 0  ;;  %s15_s11 = sshll.u32 %s187_s0, 4  ;;  %s23_s14 = sshll.u32 %s188_s1, 4  ;;  %s16_s11 = int_to_ptr.hbm [resolvable:$true] %s15_s11  ;;  %s24_s14 = int_to_ptr.hbm [resolvable:$true] %s23_s14 }
   0x3   :  { %s154_s15 = smov [#allocation2]   ;;  %s155_s16 = smov [#allocation6]  }
   0x4   :  { %18 = dma.hbm_to_smem %s16_s11, 16, %s154_s15, [#allocation5]  }
   0x5   :  { %s25_s17 = sshll.u32 %s155_s16, 4  ;;  %s156_s18 = smov 128   ;;  %s26_s17 = int_to_ptr.vmem [resolvable:$true] %s25_s17 }
   0x6   :  { %s157_s19 = smov 8  }
   0x7   :  { %31 = dma.hbm_to_vmem [thread:$0]  %s24_s14, 256, %s26_s17, [#allocation3], %s156_s18, %s156_s18, %s157_s19  }
   0x8   :  { %148 = dma.done.wait [#allocation5], 16  }
   0x9   :  { %149 = vsyncadd [#allocation5], 4294967280 }
   0xa   :  { %150 = dma.done.wait [#allocation3], 256  }
   0xb   :  { %151 = vsyncadd [#allocation3], 4294967040 }
   0xc   :  { %40 = sfence }
   0xd   :  { %s41_s0 = sld [smem:[#allocation2]]  ;;  %vm44_vm0 = vcmask 253952   ;;  %s158_s1 = smov [#allocation7]  }
   0xe   :  { %s80_s20 = sld [smem:[#allocation2 + $0x1]]  ;;  %s63_s23 = sshll.u32 %s158_s1, 4  ;;  %s64_s23 = int_to_ptr.vmem [resolvable:$true] %s63_s23 }
   0xf   :  { %s81_s21 = sld [smem:[#allocation2 + $0x2]]  ;;  %s65_s26 = sshll.u32 %s189_s2, 4  ;;  %s66_s26 = int_to_ptr.hbm [resolvable:$true] %s65_s26 }
  0x10   :  { %s82_s22 = sld [smem:[#allocation2 + $0x3]] }
  0x13   :  { %s42_s27 = scalar_lea.vmem [#allocation6], %s41_s0 }
  0x14   :  { %v43_v0 = vld [vmem:[%s42_s27] sm:$0x1]  ;;  %s47_s28 = scalar_lea.vmem [#allocation6], %s80_s20 }
  0x15   :  { %45 = vst.msk [vmem:[#allocation7] sm:$0x1] %vm44_vm0, %v43_v0  ;;  %v48_v1 = vld [vmem:[%s47_s28] sm:$0x1]  ;;  %s51_s29 = scalar_lea.vmem [#allocation6], %s81_s21 }
  0x16   :  { %49 = vst.msk [vmem:[#allocation7 + $0x1] sm:$0x1] %vm44_vm0, %v48_v1  ;;  %v52_v2 = vld [vmem:[%s51_s29] sm:$0x1]  ;;  %s55_s30 = scalar_lea.vmem [#allocation6], %s82_s22 }
  0x17   :  { %53 = vst.msk [vmem:[#allocation7 + $0x2] sm:$0x1] %vm44_vm0, %v52_v2  ;;  %v56_v3 = vld [vmem:[%s55_s30] sm:$0x1] }
  0x18   :  { %57 = vst.msk [vmem:[#allocation7 + $0x3] sm:$0x1] %vm44_vm0, %v56_v3 }
  0x19   :  { %68 = dma.vmem_to_hbm [thread:$0]  %s64_s23, 64, %s66_s26, [#allocation4]  }
  0x1a   :  { %152 = dma.done.wait [#allocation4], 64  }
  0x1b   :  { %153 = vsyncadd [#allocation4], 4294967232 }
  0x1c   :  { %73 = vsyncpa [#allocation3], 1 }
  0x1d   :  { %74 = vsyncpa [#allocation4], 1 }
  0x1e   :  { %75 = vsyncpa [#allocation5], 1 }

</bundles_post_ra>
